<compile_context>
chip_gen: v5e
topology: v5e:2x2
jax: 0.10.0
libtpu: 0.0.40
codegen_flags: <defaults>
</compile_context>

<pallas_src>
import functools

import jax
import jax.numpy as jnp
from jax.experimental import pallas as pl
from jax.experimental.pallas import tpu as pltpu


def _sine_kernel(x_ref, o_ref, *, w0):
    # Pure elementwise: mul on the VPU, sin on the EUP; fully hidden under DMA.
    o_ref[...] = jnp.sin(w0 * x_ref[...])


def sine(x, w0=1.0, *, max_cols=4096, target_tile_bytes=2 * 1024 * 1024):
    """Computes sin(w0 * x) elementwise, matching torch.sin(w0 * x)."""
    orig_shape = x.shape

    # torch.sin promotes integer inputs to float32 and returns float32.
    if not jnp.issubdtype(x.dtype, jnp.floating):
        x = x.astype(jnp.float32)
    dtype = x.dtype

    n = x.size
    if n == 0:
        return jnp.zeros(orig_shape, dtype)

    x_flat = x.reshape(-1)

    # Lane-dense column count: largest multiple of 128 (<= max_cols) that
    # divides the total element count -> zero padding in the common case.
    cols = 0
    c = 128
    while c <= max_cols:
        if n % c == 0:
            cols = c
        c += 128

    pad = 0
    if cols == 0:
        # Ragged size: pad only the tail up to one row of 1024 lanes.
        cols = min(max_cols, 1024)
        n_padded = pl.cdiv(n, cols) * cols
        pad = n_padded - n
        x_flat = jnp.pad(x_flat, (0, pad))
    else:
        n_padded = n

    rows = n_padded // cols
    x2 = x_flat.reshape(rows, cols)

    # Block rows: ~target_tile_bytes per tile, rounded to the packed sublane
    # count for the dtype (8 for f32, 16 for bf16, 32 for 8-bit types).
    itemsize = jnp.dtype(dtype).itemsize
    sublane_pack = 8 * max(1, 4 // itemsize)
    block_rows = max(1, target_tile_bytes // (cols * itemsize))
    block_rows = max(sublane_pack, (block_rows // sublane_pack) * sublane_pack)
    if block_rows >= rows:
        block_rows = rows  # full array dim -> always a legal block shape

    grid = (pl.cdiv(rows, block_rows),)

    out2 = pl.pallas_call(
        functools.partial(_sine_kernel, w0=float(w0)),
        out_shape=jax.ShapeDtypeStruct((rows, cols), dtype),
        grid=grid,
        in_specs=[pl.BlockSpec((block_rows, cols), lambda i: (i, 0))],
        out_specs=pl.BlockSpec((block_rows, cols), lambda i: (i, 0)),
        compiler_params=pltpu.CompilerParams(
            dimension_semantics=("parallel",),
        ),
    )(x2)

    out_flat = out2.reshape(-1)
    if pad:
        out_flat = out_flat[:n]
    return out_flat.reshape(orig_shape)


if __name__ == "__main__":
    key = jax.random.PRNGKey(0)

    # SIREN-like hidden activation: (batch=2, seq=8, hidden=32), typical w0=30.
    x = jax.random.normal(key, (2, 8, 32), dtype=jnp.float32)
    w0 = 30.0
    y = jax.block_until_ready(sine(x, w0))
    y_ref = jnp.sin(w0 * x)
    assert y.shape == x.shape and y.dtype == x.dtype
    assert jnp.allclose(y, y_ref, atol=1e-5, rtol=1e-5)

    # Ragged size (exercises the tail-pad path).
    x2 = jax.random.normal(jax.random.PRNGKey(1), (3, 5, 7), dtype=jnp.float32)
    y2 = jax.block_until_ready(sine(x2, w0))
    assert y2.shape == x2.shape and y2.dtype == x2.dtype
    assert jnp.allclose(y2, jnp.sin(w0 * x2), atol=1e-5, rtol=1e-5)

    # Larger, multi-tile case (exercises the grid / pipelining path).
    x3 = jax.random.normal(jax.random.PRNGKey(2), (8, 1024, 256), dtype=jnp.float32)
    y3 = jax.block_until_ready(sine(x3, 1.0))
    assert jnp.allclose(y3, jnp.sin(x3), atol=1e-5, rtol=1e-5)

    print("KERNEL_OK")
</pallas_src>

<mosaic_0001>
module attributes {stable_mosaic.version = 11 : i64} {
  func.func @_sine_kernel(%arg0: i32, %arg1: memref<1x512xf32, #tpu.memory_space<vmem>>, %arg2: memref<1x512xf32, #tpu.memory_space<vmem>>) attributes {dimension_semantics = [#tpu.dimension_semantics<parallel>], iteration_bounds = array<i64: 1>, scalar_prefetch = 0 : i64, scratch_operands = 0 : i64, tpu.core_type = #tpu.core_type<tc>, window_params = [{transform_indices = @transform_0, window_bounds = array<i64: 1, 512>}, {transform_indices = @transform_1, window_bounds = array<i64: 1, 512>}]} {
    %c0 = arith.constant 0 : index
    %c0_0 = arith.constant 0 : index
    %0 = vector.load %arg1[%c0, %c0_0] : memref<1x512xf32, #tpu.memory_space<vmem>>, vector<1x512xf32>
    %cst = arith.constant 3.000000e+01 : f32
    %1 = vector.broadcast %cst : f32 to vector<1x512xf32>
    %2 = arith.mulf %1, %0 : vector<1x512xf32>
    %3 = math.sin %2 : vector<1x512xf32>
    %c0_1 = arith.constant 0 : index
    %c0_2 = arith.constant 0 : index
    %4 = vector.load %arg2[%c0_1, %c0_2] : memref<1x512xf32, #tpu.memory_space<vmem>>, vector<1x512xf32>
    tpu.vector_store %arg2[%c0_1, %c0_2], %3 {strides = array<i32>} : memref<1x512xf32, #tpu.memory_space<vmem>>, vector<1x512xf32>,
    return
  }
  func.func @transform_0(%arg0: i32) -> (i32, i32) {
    %c0_i32 = arith.constant 0 : i32
    %c0_i32_0 = arith.constant 0 : i32
    return %arg0, %c0_i32 : i32, i32
  }
  func.func @transform_1(%arg0: i32) -> (i32, i32) {
    %c0_i32 = arith.constant 0 : i32
    %c0_i32_0 = arith.constant 0 : i32
    return %arg0, %c0_i32 : i32, i32
  }
}

</mosaic_0001>

<bundles_post_ra>
// kernel: tpu_custom_call.1
= control target key start
LH: loop header
LB: loop body
LE: loop exit
PB: predicated region body
PF: predicated region fallthrough
CT: control target
= control target key end

     0   :  { %6 = vsyncpa [#allocation3], 0  ;;  %s337_s0 = inlined_call_operand.hbm [shape: f32[1,512], index: 0, kind: input, shape index: {}]   ;;  %s338_s1 = inlined_call_operand.hbm [shape: f32[1,512], index: 1, kind: output, shape index: {}]  }
   0x1   :  { %7 = vsyncpa [#allocation4], 0  ;;  %s13_s8 = sshll.u32 %s337_s0, 4  ;;  %s266_s9 = smov [#allocation2]   ;;  %s14_s8 = int_to_ptr.hbm [resolvable:$true] %s13_s8 }
   0x2   :  { %s15_s10 = sshll.u32 %s266_s9, 4  ;;  %s16_s10 = int_to_ptr.vmem [resolvable:$true] %s15_s10 }
   0x3   :  { %18 = dma.hbm_to_vmem [thread:$0]  %s14_s8, 64, %s16_s10, [#allocation3]  }
   0x4   :  { %262 = dma.done.wait [#allocation3], 64  }
   0x5   :  { %263 = vsyncadd [#allocation3], 4294967232  ;;  %v23_v0 = vld [vmem:[#allocation2] sm:$0xf]  ;;  %v267_v13 = vmov 683565275  }
   0x6   :  { %v288_v1 = vmul.f32 30.0, %v23_v0  ;;  %v268_v15 = vmov 2475754826   ;;  %v269_v17 = vmov 2131351028   ;;  %s274_s0 = smov [#allocation5]  }
   0x7   :  { %v270_v19 = vmov 2102212464   ;;  %v271_v21 = vmov 920167782   ;;  %v272_v27 = vmov 1326507024  }
   0x8   :  { %v28_v2 = vand.u32 2139095040, %v288_v1  ;;  %v25_v4 = vand.u32 2147483647, %v288_v1  ;;  %vm27_vm12 = vcmp.lt.s32.totalorder %v288_v1, 0  ;;  %s190_s11 = sshll.u32 %s274_s0, 4  ;;  %s192_s14 = sshll.u32 %s338_s1, 4  ;;  %s191_s11 = int_to_ptr.vmem [resolvable:$true] %s190_s11  ;;  %s193_s14 = int_to_ptr.hbm [resolvable:$true] %s192_s14 }
   0xa   :  { %v29_v3 = vshrl.u32 %v28_v2, 23  ;;  %v32_v7 = vand.u32 8388607, %v25_v4  ;;  %v273_v2 = vmov 0   ;;  %vm26_vm13 = vcmp.le.f32.partialorder %v25_v4, 0.7853982 }
   0xc   :  { %v202_v5 = vadd.s32 4294967169, %v29_v3  ;;  %v33_v10 = vor.u32 8388608, %v32_v7 }
   0xe   :  { %v35_v6 = vadd.s32 1, %v202_v5  ;;  %v297_v29 = vshll.u32 %v33_v10, 8 }
  0x10   :  { %vm36_vm0 = vcmp.gt.s32.totalorder %v35_v6, 0  ;;  %v74_v41 = vand.u32 65535, %v297_v29  ;;  %v75_v42 = vshrl.u32 %v297_v29, 16 }
  0x11   :  { %v37_v8 = vsel %vm36_vm0, %v35_v6, 0 }
  0x12   :  { %v39_v9 = vand.u32 31, %v37_v8  ;;  %v294_v11 = vshrl.u32 %v37_v8, 5 }
  0x14   :  { %v40_v12 = vsub.s32 32, %v39_v9  ;;  %v42_v14 = vshll.u32 %v267_v13, %v39_v9  ;;  %v45_v16 = vshll.u32 %v268_v15, %v39_v9  ;;  %v48_v18 = vshll.u32 %v269_v17, %v39_v9 }
  0x15   :  { %v51_v20 = vshll.u32 %v270_v19, %v39_v9  ;;  %v54_v22 = vshll.u32 %v271_v21, %v39_v9  ;;  %vm57_vm1 = vcmp.lt.s32.totalorder %v294_v11, 1  ;;  %vm60_vm2 = vcmp.lt.s32.totalorder %v294_v11, 4 }
  0x16   :  { %v43_v23 = vshrl.u32 %v268_v15, %v40_v12  ;;  %v46_v24 = vshrl.u32 %v269_v17, %v40_v12  ;;  %v49_v25 = vshrl.u32 %v270_v19, %v40_v12  ;;  %v52_v26 = vshrl.u32 %v271_v21, %v40_v12 }
  0x17   :  { %v55_v28 = vshrl.u32 %v272_v27, %v40_v12  ;;  %vm59_vm3 = vcmp.lt.s32.totalorder %v294_v11, 3  ;;  %vm58_vm4 = vcmp.lt.s32.totalorder %v294_v11, 2  ;;  %v41_v49 = vshrl.u32 %v267_v13, %v40_v12 }
  0x18   :  { %v44_v30 = vor.u32 %v43_v23, %v42_v14  ;;  %v47_v31 = vor.u32 %v46_v24, %v45_v16  ;;  %v50_v32 = vor.u32 %v49_v25, %v48_v18  ;;  %v53_v33 = vor.u32 %v52_v26, %v51_v20 }
  0x19   :  { %v56_v34 = vor.u32 %v55_v28, %v54_v22 }
  0x1a   :  { %v65_v35 = vsel %vm57_vm1, %v44_v30, %v47_v31  ;;  %v69_v36 = vsel %vm57_vm1, %v47_v31, %v50_v32  ;;  %v66_v37 = vsel %vm60_vm2, %v53_v33, 920167782  ;;  %v61_v62 = vsel %vm57_vm1, %v41_v49, %v44_v30 }
  0x1b   :  { %v70_v38 = vsel %vm60_vm2, %v56_v34, 1326507024  ;;  %v67_v39 = vsel %vm59_vm3, %v50_v32, %v66_v37  ;;  %v62_v0 = vsel %vm60_vm2, %v50_v32, 2102212464  ;;  %vm168_vm1 = vweird.f32 %v288_v1 }
  0x1c   :  { %v71_v40 = vsel %vm59_vm3, %v53_v33, %v70_v38  ;;  %v68_v43 = vsel %vm58_vm4, %v65_v35, %v67_v39  ;;  %v63_v13 = vsel %vm59_vm3, %v47_v31, %v62_v0 }
  0x1d   :  { %v72_v44 = vsel %vm58_vm4, %v69_v36, %v71_v40  ;;  %v98_v47 = vand.u32 65535, %v68_v43  ;;  %v99_v48 = vshrl.u32 %v68_v43, 16  ;;  %v64_v21 = vsel %vm58_vm4, %v61_v62, %v63_v13 }
  0x1e   :  { %v76_v45 = vand.u32 65535, %v72_v44  ;;  %v77_v46 = vshrl.u32 %v72_v44, 16  ;;  %v118_v25 = vmul.u32 %v297_v29, %v64_v21 }
  0x1f   :  { %v100_v53 = vmul.u32 %v98_v47, %v74_v41  ;;  %v101_v54 = vmul.u32 %v99_v48, %v74_v41  ;;  %v102_v55 = vmul.u32 %v98_v47, %v75_v42  ;;  %v103_v59 = vmul.u32 %v99_v48, %v75_v42 }
  0x20   :  { %v78_v50 = vmul.u32 %v76_v45, %v74_v41  ;;  %v79_v51 = vmul.u32 %v77_v46, %v74_v41  ;;  %v80_v52 = vmul.u32 %v76_v45, %v75_v42  ;;  %v81_v56 = vmul.u32 %v77_v46, %v75_v42 }
  0x21   :  { %v104_v60 = vshll.u32 %v101_v54, 16  ;;  %v106_v61 = vshll.u32 %v102_v55, 16  ;;  %v105_v10 = vshrl.u32 %v101_v54, 16  ;;  %v107_v17 = vshrl.u32 %v102_v55, 16 }
  0x22   :  { %v82_v57 = vshll.u32 %v79_v51, 16  ;;  %v84_v58 = vshll.u32 %v80_v52, 16  ;;  %v83_v6 = vshrl.u32 %v79_v51, 16  ;;  %v85_v14 = vshrl.u32 %v80_v52, 16 }
  0x23   :  { %vm108_vm6 = vc.u32 %v100_v53, %v104_v60  ;;  %v110_v5 = vadd.s32 %v104_v60, %v100_v53 }
  0x24   :  { %vm86_vm5 = vc.u32 %v78_v50, %v82_v57  ;;  %v88_v63 = vadd.s32 %v82_v57, %v78_v50  ;;  %v109_v8 = vsel %vm108_vm6, 1, %v273_v2 }
  0x25   :  { %v87_v3 = vsel %vm86_vm5, 1, %v273_v2  ;;  %v111_v12 = vadd.s32 %v109_v8, %v103_v59  ;;  %vm112_vm8 = vc.u32 %v110_v5, %v106_v61  ;;  %v114_v20 = vadd.s32 %v110_v5, %v106_v61 }
  0x26   :  { %v89_v7 = vadd.s32 %v87_v3, %v81_v56  ;;  %vm90_vm7 = vc.u32 %v88_v63, %v84_v58  ;;  %v113_v16 = vsel %vm112_vm8, 1, %v273_v2 }
  0x27   :  { %v91_v9 = vsel %vm90_vm7, 1, %v273_v2  ;;  %v115_v18 = vadd.s32 %v113_v16, %v111_v12 }
  0x28   :  { %v93_v15 = vadd.s32 %v91_v9, %v89_v7  ;;  %v180_v9 = vlaneseq }
  0x29   :  { %v116_v22 = vadd.s32 %v115_v18, %v105_v10 }
  0x2a   :  { %v94_v19 = vadd.s32 %v93_v15, %v83_v6  ;;  %vm182_vm2 = vcmp.lt.s32.totalorder %v180_v9, 512 }
  0x2b   :  { %v117_v24 = vadd.s32 %v116_v22, %v107_v17 }
  0x2c   :  { %v95_v23 = vadd.s32 %v94_v19, %v85_v14 }
  0x2d   :  { %v121_v26 = vadd.s32 1, %v117_v24 }
  0x2e   :  { %vm120_vm9 = vc.u32 %v95_v23, %v114_v20  ;;  %v119_v11 = vadd.s32 %v114_v20, %v95_v23 }
  0x2f   :  { %v122_v27 = vsel %vm120_vm9, %v121_v26, %v117_v24 }
  0x30   :  { %v123_v28 = vadd.s32 %v122_v27, %v118_v25 }
  0x32   :  { %v124_v30 = vadd.s32 536870912, %v123_v28 }
  0x34   :  { %v125_v31 = vshrl.u32 %v124_v30, 30 }
  0x36   :  { %v126_v32 = vshll.u32 %v125_v31, 30  ;;  %v149_v49 = vsub.s32 4, %v125_v31 }
  0x38   :  { %v127_v33 = vsub.s32 %v123_v28, %v126_v32  ;;  %v150_v52 = vsel %vm27_vm12, %v149_v49, %v125_v31 }
  0x39   :  { %v152_v55 = vsel %vm26_vm13, 0, %v150_v52 }
  0x3a   :  { %vm128_vm10 = vcmp.lt.s32.totalorder %v127_v33, 0  ;;  %v129_v34 = vsub.s32 0, %v127_v33  ;;  %v169_v60 = vadd.s32 3, %v152_v55 }
  0x3c   :  { %v130_v35 = vsel %vm128_vm10, %v129_v34, %v127_v33  ;;  %v170_v2 = vand.u32 3, %v169_v60 }
  0x3d   :  { %v131_v36 = vclz %v130_v35 }
  0x3e   :  { %vm175_vm14 = vcmp.eq.s32.totalorder %v170_v2, 2  ;;  %vm172_vm15 = vcmp.eq.s32.totalorder %v170_v2, 0  ;;  %vm171_vm0 = vcmp.lt.s32.totalorder %v170_v2, 2 }
  0x3f   :  { %v203_v37 = vadd.s32 4294967294, %v131_v36 }
  0x41   :  { %vm204_vm11 = vcmp.lt.s32.totalorder %v203_v37, 0 }
  0x42   :  { %v134_v38 = vsel %vm204_vm11, 0, %v203_v37 }
  0x43   :  { %v135_v39 = vsub.s32 32, %v134_v38  ;;  %v136_v40 = vshll.u32 %v127_v33, %v134_v38  ;;  %v139_v41 = vsub.s32 4294967266, %v134_v38 }
  0x45   :  { %v137_v29 = vshrl.u32 %v119_v11, %v135_v39  ;;  %v140_v42 = vadd.s32 127, %v139_v41 }
  0x47   :  { %v138_v43 = vor.u32 %v137_v29, %v136_v40  ;;  %v141_v44 = vshll.u32 %v140_v42, 23 }
  0x49   :  { %v142_v45 = vor.u32 4788187, %v141_v44  ;;  %v145_v46 = vcvt.s32.f32 %v138_v43 }
  0x4b   :  { %v143_v47 = vand.u32 2147483647, %v142_v45 }
  0x4d   :  { %v146_v48 = vmul.f32 %v145_v46, %v143_v47 }
  0x4f   :  { %v147_v50 = vxor.u32 2147483648, %v146_v48 }
  0x51   :  { %v148_v51 = vsel %vm27_vm12, %v147_v50, %v146_v48 }
  0x52   :  { %v151_v53 = vsel %vm26_vm13, %v288_v1, %v148_v51 }
  0x53   :  { %v153_v54 = vmul.f32 %v151_v53, %v151_v53 }
  0x55   :  { %v154_v56 = vmul.f32 -0.001358992, %v153_v54  ;;  %v161_v57 = vmul.f32 -0.00019511016, %v153_v54 }
  0x57   :  { %v155_v58 = vadd.f32 0.041655596, %v154_v56  ;;  %v162_v59 = vadd.f32 0.008332121, %v161_v57 }
  0x59   :  { %v156_v61 = vmul.f32 %v155_v58, %v153_v54  ;;  %v163_v62 = vmul.f32 %v162_v59, %v153_v54 }
  0x5b   :  { %v157_v63 = vadd.f32 -0.4999988, %v156_v61  ;;  %v164_v0 = vadd.f32 -0.16666654, %v163_v62 }
  0x5d   :  { %v158_v3 = vmul.f32 %v157_v63, %v153_v54  ;;  %v165_v5 = vmul.f32 %v164_v0, %v153_v54 }
  0x5f   :  { %v159_v4 = vadd.f32 1.0, %v158_v3  ;;  %v166_v6 = vadd.f32 1.0, %v165_v5 }
  0x61   :  { %v167_v7 = vmul.f32 %v166_v6, %v151_v53  ;;  %v176_v8 = vxor.u32 2147483648, %v159_v4 }
  0x63   :  { %v173_v10 = vxor.u32 2147483648, %v167_v7  ;;  %v177_v12 = vsel %vm175_vm14, %v176_v8, %v167_v7 }
  0x65   :  { %v174_v13 = vsel %vm172_vm15, %v159_v4, %v173_v10 }
  0x66   :  { %v178_v14 = vsel %vm171_vm0, %v174_v13, %v177_v12 }
  0x67   :  { %v179_v15 = vsel %vm168_vm1, nan, %v178_v14 }
  0x68   :  { %184 = vst.msk [vmem:[#allocation5] sm:$0xf] %vm182_vm2, %v179_v15 }
  0x69   :  { %195 = dma.vmem_to_hbm [thread:$0]  %s191_s11, 64, %s193_s14, [#allocation4]  }
  0x6a   :  { %264 = dma.done.wait [#allocation4], 64  }
  0x6b   :  { %265 = vsyncadd [#allocation4], 4294967232 }
  0x6c   :  { %200 = vsyncpa [#allocation3], 1 }
  0x6d   :  { %201 = vsyncpa [#allocation4], 1 }

</bundles_post_ra>
